<compile_context>
chip_gen: v6e
topology: v6e:2x2x1
jax: 0.10.0
libtpu: 0.0.40
codegen_flags: <defaults>
</compile_context>

<pallas_src>
import jax
import jax.numpy as jnp
from jax.experimental import pallas as pl
from jax.experimental.pallas import tpu as pltpu


def gconv_gated_kernel(x_ref, h_ref, adj_ref, wx_ref, wh_ref, bx_ref, bh_ref, o_ref):
    # One grid step == one graph. All tiles live in VMEM; the hot path is
    # 3 lane-dense MXU matmuls + one fused sigmoid pass + gate elementwise.
    x = x_ref[...]        # (N, F)
    h = h_ref[...]        # (N, F)
    adj = adj_ref[...]    # (N, N)
    F = x.shape[-1]

    # Fused input/hidden projections: (N, 4F) each, packed biases folded in once.
    gx = jnp.dot(x, wx_ref[...], preferred_element_type=jnp.float32) + bx_ref[...]
    gh = jnp.dot(h, wh_ref[...], preferred_element_type=jnp.float32) + bh_ref[...]

    # r/z gates in a single lane-dense sigmoid pass over a (N, 2F) slab.
    rz = jax.nn.sigmoid(gx[:, : 2 * F] + gh[:, : 2 * F])
    r = rz[:, :F]
    z = rz[:, F:]

    # Candidate state n and GRU-style blend.
    n = jnp.maximum(gx[:, 2 * F : 3 * F] + r * gh[:, 2 * F : 3 * F], 0.0)
    next_hidden = (1.0 - z) * n + z * h

    # Graph propagation; gx[:, 3F:] already holds x @ w_loop + output bias.
    out = jnp.dot(adj, next_hidden, preferred_element_type=jnp.float32) + gx[:, 3 * F :]
    o_ref[...] = out.astype(o_ref.dtype)


def gconv_gated(inputs, hidden, adj_mat, weights, biases):
    """Batched gated GCN layer.

    inputs, hidden : (B, N, F) float32
    adj_mat        : reshapable to (B, N, N)  (e.g. (B, N, N) or (B, 1, N, N))
    weights        : (7, F, F)  order: w_ir, w_hr, w_iz, w_hz, w_in, w_hn, w_loop
    biases         : (7, F)     order: b_ir, b_hr, b_iz, b_hz, b_in, b_hn, bias
    returns        : (B, N, F) float32
    """
    B, N, F = inputs.shape
    adj = adj_mat.reshape(B, N, N).astype(jnp.float32)   # no over-eager squeeze

    w = weights.astype(jnp.float32)
    b = biases.astype(jnp.float32)
    zero_w = jnp.zeros((F, F), jnp.float32)
    zero_b = jnp.zeros((F,), jnp.float32)

    # x-side: [w_ir | w_iz | w_in | w_loop];  h-side: [w_hr | w_hz | w_hn | 0]
    wx = jnp.concatenate([w[0], w[2], w[4], w[6]], axis=1)        # (F, 4F)
    wh = jnp.concatenate([w[1], w[3], w[5], zero_w], axis=1)      # (F, 4F)
    bx = jnp.concatenate([b[0], b[2], b[4], b[6]])[None, :]       # (1, 4F)
    bh = jnp.concatenate([b[1], b[3], b[5], zero_b])[None, :]     # (1, 4F)

    # Explicit VMEM budget: resident weight/bias slabs + double-buffered tiles.
    tile_bytes = 4 * (3 * N * F + N * N)                # x + h + out + adj tiles (f32)
    resident_bytes = 4 * (2 * F * 4 * F + 2 * 4 * F)    # wx, wh, bx, bh
    vmem_limit = max(resident_bytes + 4 * tile_bytes + (1 << 20), 16 << 20)

    grid_spec = pltpu.PrefetchScalarGridSpec(
        num_scalar_prefetch=0,
        grid=(B,),
        in_specs=[
            pl.BlockSpec((None, N, F), lambda bi: (bi, 0, 0)),   # x    (per graph)
            pl.BlockSpec((None, N, F), lambda bi: (bi, 0, 0)),   # h    (per graph)
            pl.BlockSpec((None, N, N), lambda bi: (bi, 0, 0)),   # adj  (per graph)
            pl.BlockSpec((F, 4 * F), lambda bi: (0, 0)),         # wx   (resident)
            pl.BlockSpec((F, 4 * F), lambda bi: (0, 0)),         # wh   (resident)
            pl.BlockSpec((1, 4 * F), lambda bi: (0, 0)),         # bx   (resident)
            pl.BlockSpec((1, 4 * F), lambda bi: (0, 0)),         # bh   (resident)
        ],
        out_specs=pl.BlockSpec((None, N, F), lambda bi: (bi, 0, 0)),
    )

    return pl.pallas_call(
        gconv_gated_kernel,
        out_shape=jax.ShapeDtypeStruct((B, N, F), jnp.float32),
        grid_spec=grid_spec,
        compiler_params=pltpu.CompilerParams(
            dimension_semantics=("parallel",),
            vmem_limit_bytes=int(vmem_limit),
        ),
    )(inputs.astype(jnp.float32), hidden.astype(jnp.float32), adj, wx, wh, bx, bh)


def _xavier_uniform(key, fan_in, fan_out):
    bound = (6.0 / (fan_in + fan_out)) ** 0.5
    return jax.random.uniform(
        key, (fan_in, fan_out), jnp.float32, minval=-bound, maxval=bound
    )


def _reference(inputs, hidden, adj_mat, w, b):
    B, N, _ = inputs.shape
    adj = adj_mat.reshape(B, N, N)
    r = jax.nn.sigmoid(inputs @ w[0] + b[0] + hidden @ w[1] + b[1])
    z = jax.nn.sigmoid(inputs @ w[2] + b[2] + hidden @ w[3] + b[3])
    n = jnp.maximum(inputs @ w[4] + b[4] + r * (hidden @ w[5] + b[5]), 0.0)
    next_hidden = (1.0 - z) * n + z * hidden
    return jnp.einsum("bij,bjf->bif", adj, next_hidden) + inputs @ w[6] + b[6]


if __name__ == "__main__":
    B = 4    # batch of graphs (grid axis; parallel across megacore TCs)
    N = 16   # nodes per graph
    F = 32   # in_features == out_features (module semantics); 4F = 128 lanes

    key = jax.random.PRNGKey(0)
    keys = jax.random.split(key, 11)

    # Xavier-uniform weights as in reset_parameters(). Biases are zero at init
    # in the module; we use small nonzero values here so the packed-bias path
    # is actually exercised by the correctness check.
    weights = jnp.stack([_xavier_uniform(keys[i], F, F) for i in range(7)])   # (7, F, F)
    biases = 0.1 * jax.random.normal(keys[7], (7, F), jnp.float32)            # (7, F)

    inputs = jax.random.normal(keys[8], (B, N, F), jnp.float32)
    hidden = jax.random.normal(keys[9], (B, N, F), jnp.float32)
    adj_mat = jax.random.uniform(keys[10], (B, N, N), jnp.float32)

    out = jax.block_until_ready(gconv_gated(inputs, hidden, adj_mat, weights, biases))

    ref = _reference(inputs, hidden, adj_mat, weights, biases)
    assert out.shape == (B, N, F)
    assert jnp.allclose(out, ref, atol=1e-4, rtol=1e-4), "mismatch vs JAX reference"

    print("KERNEL_OK")
</pallas_src>

<mosaic_0001>
module attributes {stable_mosaic.version = 11 : i64} {
  func.func @gconv_gated_kernel(%arg0: i32, %arg1: memref<1x16x32xf32, #tpu.memory_space<vmem>>, %arg2: memref<1x16x32xf32, #tpu.memory_space<vmem>>, %arg3: memref<1x16x16xf32, #tpu.memory_space<vmem>>, %arg4: memref<32x128xf32, #tpu.memory_space<vmem>>, %arg5: memref<32x128xf32, #tpu.memory_space<vmem>>, %arg6: memref<1x128xf32, #tpu.memory_space<vmem>>, %arg7: memref<1x128xf32, #tpu.memory_space<vmem>>, %arg8: memref<1x16x32xf32, #tpu.memory_space<vmem>>) attributes {dimension_semantics = [#tpu.dimension_semantics<parallel>], iteration_bounds = array<i64: 4>, scalar_prefetch = 0 : i64, scratch_operands = 0 : i64, tpu.core_type = #tpu.core_type<tc>, window_params = [{transform_indices = @transform_0, window_bounds = array<i64: 1, 16, 32>}, {transform_indices = @transform_1, window_bounds = array<i64: 1, 16, 32>}, {transform_indices = @transform_2, window_bounds = array<i64: 1, 16, 16>}, {pipeline_mode = #tpu.pipeline_mode<synchronous>, transform_indices = @transform_3, window_bounds = array<i64: 32, 128>}, {pipeline_mode = #tpu.pipeline_mode<synchronous>, transform_indices = @transform_4, window_bounds = array<i64: 32, 128>}, {pipeline_mode = #tpu.pipeline_mode<synchronous>, transform_indices = @transform_5, window_bounds = array<i64: 1, 128>}, {pipeline_mode = #tpu.pipeline_mode<synchronous>, transform_indices = @transform_6, window_bounds = array<i64: 1, 128>}, {transform_indices = @transform_7, window_bounds = array<i64: 1, 16, 32>}]} {
    %c0 = arith.constant 0 : index
    %c0_0 = arith.constant 0 : index
    %c0_1 = arith.constant 0 : index
    %0 = vector.load %arg1[%c0, %c0_0, %c0_1] : memref<1x16x32xf32, #tpu.memory_space<vmem>>, vector<1x16x32xf32>
    %1 = vector.shape_cast %0 : vector<1x16x32xf32> to vector<16x32xf32>
    %c0_2 = arith.constant 0 : index
    %c0_3 = arith.constant 0 : index
    %c0_4 = arith.constant 0 : index
    %2 = vector.load %arg2[%c0_2, %c0_3, %c0_4] : memref<1x16x32xf32, #tpu.memory_space<vmem>>, vector<1x16x32xf32>
    %3 = vector.shape_cast %2 : vector<1x16x32xf32> to vector<16x32xf32>
    %c0_5 = arith.constant 0 : index
    %c0_6 = arith.constant 0 : index
    %c0_7 = arith.constant 0 : index
    %4 = vector.load %arg3[%c0_5, %c0_6, %c0_7] : memref<1x16x16xf32, #tpu.memory_space<vmem>>, vector<1x16x16xf32>
    %5 = vector.shape_cast %4 : vector<1x16x16xf32> to vector<16x16xf32>
    %c0_8 = arith.constant 0 : index
    %c0_9 = arith.constant 0 : index
    %6 = vector.load %arg4[%c0_8, %c0_9] : memref<32x128xf32, #tpu.memory_space<vmem>>, vector<32x128xf32>
    %cst = arith.constant dense<0.000000e+00> : vector<16x128xf32>
    %7 = tpu.matmul %1, %6, %cst {dimension_numbers = #tpu.dot_dimension_numbers<[1], [0], [0], [1], [0, 0, 1, 1], [], []>} : vector<16x32xf32>, vector<32x128xf32>, vector<16x128xf32> -> vector<16x128xf32>
    %c0_10 = arith.constant 0 : index
    %c0_11 = arith.constant 0 : index
    %8 = vector.load %arg6[%c0_10, %c0_11] : memref<1x128xf32, #tpu.memory_space<vmem>>, vector<1x128xf32>
    %9 = vector.broadcast %8 : vector<1x128xf32> to vector<16x128xf32>
    %10 = arith.addf %7, %9 : vector<16x128xf32>
    %c0_12 = arith.constant 0 : index
    %c0_13 = arith.constant 0 : index
    %11 = vector.load %arg5[%c0_12, %c0_13] : memref<32x128xf32, #tpu.memory_space<vmem>>, vector<32x128xf32>
    %cst_14 = arith.constant dense<0.000000e+00> : vector<16x128xf32>
    %12 = tpu.matmul %3, %11, %cst_14 {dimension_numbers = #tpu.dot_dimension_numbers<[1], [0], [0], [1], [0, 0, 1, 1], [], []>} : vector<16x32xf32>, vector<32x128xf32>, vector<16x128xf32> -> vector<16x128xf32>
    %c0_15 = arith.constant 0 : index
    %c0_16 = arith.constant 0 : index
    %13 = vector.load %arg7[%c0_15, %c0_16] : memref<1x128xf32, #tpu.memory_space<vmem>>, vector<1x128xf32>
    %14 = vector.broadcast %13 : vector<1x128xf32> to vector<16x128xf32>
    %15 = arith.addf %12, %14 : vector<16x128xf32>
    %16 = vector.extract_strided_slice %10 {offsets = [0, 0], sizes = [16, 64], strides = [1, 1]} : vector<16x128xf32> to vector<16x64xf32>
    %17 = vector.extract_strided_slice %15 {offsets = [0, 0], sizes = [16, 64], strides = [1, 1]} : vector<16x128xf32> to vector<16x64xf32>
    %18 = arith.addf %16, %17 : vector<16x64xf32>
    %19 = arith.negf %18 : vector<16x64xf32>
    %20 = math.exp %19 : vector<16x64xf32>
    %cst_17 = arith.constant 1.000000e+00 : f32
    %21 = vector.broadcast %cst_17 : f32 to vector<16x64xf32>
    %22 = arith.addf %21, %20 : vector<16x64xf32>
    %23 = arith.divf %21, %22 : vector<16x64xf32>
    %24 = vector.extract_strided_slice %23 {offsets = [0, 0], sizes = [16, 32], strides = [1, 1]} : vector<16x64xf32> to vector<16x32xf32>
    %25 = vector.extract_strided_slice %23 {offsets = [0, 32], sizes = [16, 32], strides = [1, 1]} : vector<16x64xf32> to vector<16x32xf32>
    %26 = vector.extract_strided_slice %10 {offsets = [0, 64], sizes = [16, 32], strides = [1, 1]} : vector<16x128xf32> to vector<16x32xf32>
    %27 = vector.extract_strided_slice %15 {offsets = [0, 64], sizes = [16, 32], strides = [1, 1]} : vector<16x128xf32> to vector<16x32xf32>
    %28 = arith.mulf %24, %27 : vector<16x32xf32>
    %29 = arith.addf %26, %28 : vector<16x32xf32>
    %cst_18 = arith.constant 0.000000e+00 : f32
    %30 = vector.broadcast %cst_18 : f32 to vector<16x32xf32>
    %31 = arith.maximumf %29, %30 : vector<16x32xf32>
    %cst_19 = arith.constant 1.000000e+00 : f32
    %32 = vector.broadcast %cst_19 : f32 to vector<16x32xf32>
    %33 = arith.subf %32, %25 : vector<16x32xf32>
    %34 = arith.mulf %33, %31 : vector<16x32xf32>
    %35 = arith.mulf %25, %3 : vector<16x32xf32>
    %36 = arith.addf %34, %35 : vector<16x32xf32>
    %cst_20 = arith.constant dense<0.000000e+00> : vector<16x32xf32>
    %37 = tpu.matmul %5, %36, %cst_20 {dimension_numbers = #tpu.dot_dimension_numbers<[1], [0], [0], [1], [0, 0, 1, 1], [], []>} : vector<16x16xf32>, vector<16x32xf32>, vector<16x32xf32> -> vector<16x32xf32>
    %38 = vector.extract_strided_slice %10 {offsets = [0, 96], sizes = [16, 32], strides = [1, 1]} : vector<16x128xf32> to vector<16x32xf32>
    %39 = arith.addf %37, %38 : vector<16x32xf32>
    %c0_21 = arith.constant 0 : index
    %c0_22 = arith.constant 0 : index
    %c0_23 = arith.constant 0 : index
    %40 = vector.load %arg8[%c0_21, %c0_22, %c0_23] : memref<1x16x32xf32, #tpu.memory_space<vmem>>, vector<1x16x32xf32>
    %41 = vector.shape_cast %40 : vector<1x16x32xf32> to vector<16x32xf32>
    %42 = vector.shape_cast %39 : vector<16x32xf32> to vector<1x16x32xf32>
    tpu.vector_store %arg8[%c0_21, %c0_22, %c0_23], %42 {strides = array<i32>} : memref<1x16x32xf32, #tpu.memory_space<vmem>>, vector<1x16x32xf32>,
    return
  }
  func.func @transform_0(%arg0: i32) -> (i32, i32, i32) {
    %c0_i32 = arith.constant 0 : i32
    %c0_i32_0 = arith.constant 0 : i32
    %c0_i32_1 = arith.constant 0 : i32
    return %arg0, %c0_i32, %c0_i32_0 : i32, i32, i32
  }
  func.func @transform_1(%arg0: i32) -> (i32, i32, i32) {
    %c0_i32 = arith.constant 0 : i32
    %c0_i32_0 = arith.constant 0 : i32
    %c0_i32_1 = arith.constant 0 : i32
    return %arg0, %c0_i32, %c0_i32_0 : i32, i32, i32
  }
  func.func @transform_2(%arg0: i32) -> (i32, i32, i32) {
    %c0_i32 = arith.constant 0 : i32
    %c0_i32_0 = arith.constant 0 : i32
    %c0_i32_1 = arith.constant 0 : i32
    return %arg0, %c0_i32, %c0_i32_0 : i32, i32, i32
  }
  func.func @transform_3(%arg0: i32) -> (i32, i32) {
    %c0_i32 = arith.constant 0 : i32
    %c0_i32_0 = arith.constant 0 : i32
    %c0_i32_1 = arith.constant 0 : i32
    return %c0_i32, %c0_i32_0 : i32, i32
  }
  func.func @transform_4(%arg0: i32) -> (i32, i32) {
    %c0_i32 = arith.constant 0 : i32
    %c0_i32_0 = arith.constant 0 : i32
    %c0_i32_1 = arith.constant 0 : i32
    return %c0_i32, %c0_i32_0 : i32, i32
  }
  func.func @transform_5(%arg0: i32) -> (i32, i32) {
    %c0_i32 = arith.constant 0 : i32
    %c0_i32_0 = arith.constant 0 : i32
    %c0_i32_1 = arith.constant 0 : i32
    return %c0_i32, %c0_i32_0 : i32, i32
  }
  func.func @transform_6(%arg0: i32) -> (i32, i32) {
    %c0_i32 = arith.constant 0 : i32
    %c0_i32_0 = arith.constant 0 : i32
    %c0_i32_1 = arith.constant 0 : i32
    return %c0_i32, %c0_i32_0 : i32, i32
  }
  func.func @transform_7(%arg0: i32) -> (i32, i32, i32) {
    %c0_i32 = arith.constant 0 : i32
    %c0_i32_0 = arith.constant 0 : i32
    %c0_i32_1 = arith.constant 0 : i32
    return %arg0, %c0_i32, %c0_i32_0 : i32, i32, i32
  }
}

</mosaic_0001>

<bundles_post_ra>
// kernel: tpu_custom_call.1
= control target key start
LH: loop header
LB: loop body
LE: loop exit
PB: predicated region body
PF: predicated region fallthrough
CT: control target
= control target key end

     0   :  { %s1661_s0 = inlined_call_operand.hbm [shape: f32[4,16,32], index: 0, kind: input, shape index: {}]   ;;  %s1662_s1 = inlined_call_operand.hbm [shape: f32[4,16,32], index: 1, kind: input, shape index: {}]   ;;  %s1663_s2 = inlined_call_operand.hbm [shape: f32[4,16,16], index: 2, kind: input, shape index: {}]   ;;  %s1664_s3 = inlined_call_operand.hbm [shape: f32[32,128], index: 3, kind: input, shape index: {}]   ;;  %s1665_s4 = inlined_call_operand.hbm [shape: f32[32,128], index: 4, kind: input, shape index: {}]   ;;  %s1666_s5 = inlined_call_operand.vmem [shape: f32[1,128], index: 5, kind: input, shape index: {}]   ;;  %s1667_s6 = inlined_call_operand.vmem [shape: f32[1,128], index: 6, kind: input, shape index: {}]   ;;  %s1668_s7 = inlined_call_operand.hbm [shape: f32[4,16,32], index: 7, kind: output, shape index: {}]  }
   0x1   :  { %1684 = sst [smem:[#allocation19_spill]] %s1662_s1 }
   0x2   :  { %1685 = sst [smem:[#allocation20_spill]] %s1664_s3 }
   0x3   :  { %1686 = sst [smem:[#allocation21_spill]] %s1665_s4 }
   0x4   :  { %12 = vsyncpa [#allocation3], 0 }
   0x5   :  { %14 = vsyncpa [#allocation3 + $0x1], 0 }
   0x6   :  { %15 = vsyncpa [#allocation6], 0 }
   0x7   :  { %17 = vsyncpa [#allocation6 + $0x1], 0 }
   0x8   :  { %18 = vsyncpa [#allocation9], 0 }
   0x9   :  { %19 = vsyncpa [#allocation4], 0 }
   0xa   :  { %21 = vsyncpa [#allocation4 + $0x1], 0  ;;  %s1341_s24 = smov 0   ;;  %s1343_s25 = smov 0  }
   0xb   :  { %s1345_s26 = smov 0   ;;  %s1347_s27 = smov 0  }
   0xc LB: > { %s1362_s28 = sadd.s32 4294967295, %s1286_s27   ;;  %s901_s29 = sadd.s32 4294967294, %s1286_s27   ;;  %s1286_s27 = sphi %s1347_s27, %s1713_s27   ;;  %s1282_s26 = sphi %s1345_s26, %s1717_s26   ;;  %s1278_s25 = sphi %s1343_s25, %s1716_s25   ;;  %s1274_s24 = sphi %s1341_s24, %s1715_s24  }
   0xd   : > { %s1366_s30 = sadd.s32 1, %s1286_s27   ;;  %s34_s8 = sadd.s32 1, %s1282_s26 }
   0xe   : > { %1687 = sst [smem:[#allocation16_spill]] %s1366_s30  ;;  %s31_s9 = ssub.s32 %s1286_s27, %s1366_s30 }
   0xf   : > { %p41_p0 = scmp.ne.s32.totalorder %s1282_s26, %s1278_s25  ;;  %p32_p1 = scmp.eq.s32.totalorder %s31_s9, 0 }
  0x10   : > { %p42_p2 = scmp.eq.s32.totalorder %s1286_s27, 0  ;;  %p47_p3 = scmp.ne.s32.totalorder %s1278_s25, %s1274_s24 }
  0x11   : > { %p1669_p4 = scmp.eq.s32.totalorder %s1362_s28, 0  ;;  %p207_p7 = scmp.eq.s32.totalorder %s1362_s28, 3 }
  0x12   : > { %s1378_s10 = scalar_select %p32_p1, %s1282_s26, %s34_s8  }
  0x13   : > { %p1380_p5 = por %p42_p2, %p41_p0  ;;  %p1386_p6 = por %p1669_p4, %p47_p3 }
  0x14   : > { %1688 = sst [smem:[#allocation17_spill]] %s1378_s10  ;;  %p213_p8 = scmp.eq.s32.totalorder %s901_s29, 3 }
  0x15   : > { %s1690_s12 = scalar_select %p1386_p6, 1, 0 }
  0x16   : > { %p902_p9 = scmp.ge.s32.totalorder %s1286_s27, 1  ;;  %p220_p10 = scmp.lt.s32.totalorder %s1286_s27, 5 }
  0x17   : > { %p1393_p11 = por %p207_p7, %p41_p0  ;;  %p1397_p12 = por %p213_p8, %p47_p3 }
  0x18   : > { %p1401_p13 = pnand %p902_p9, %p220_p10  ;;  %s1288_s16 = smov [#allocation8]  }
  0x19   : > { %s1691_s13 = scalar_select %p1393_p11, 1, 0 }
  0x1a   : > { %s1692_s14 = scalar_select %p1397_p12, 1, 0 }
  0x1b   : > { %s1694_s15 = scalar_select %p1401_p13, 1, 0 }
  0x1c   : > { %1693 = sst [smem:[#allocation18_spill]] %s1692_s14  ;;  %p1002_p1 = pneg %p1401_p13 }
  0x1d   : > { %s232_s17 = sshll.u32 %s1288_s16, 4  ;;  %p1025_p0 = scmp.lt.s32.totalorder %s1286_s27, 4  ;;  %s233_s17 = int_to_ptr.vmem [resolvable:$true] %s232_s17 }
  0x1e   : > { %p1409_p2 = pnand %p1002_p1, %p1669_p4  ;;  %s1670_s19 = sand.u32 1, %s1282_s26  }
  0x1f   : > { %s1417_s20 = sshll.u32 %s1670_s19, 4  ;;  %s1089_s21 = scalar_lea.vmem %s233_s17, 512 }
  0x20   : > { %s1695_s18 = scalar_select %p1409_p2, 1, 0 }
  0x21   : > { %p1677_p3 = pneg %p1409_p2  ;;  %p1090_p7 = scmp.ne.s32.totalorder %s233_s17, %s1089_s21 }
  0x22   : > { %p1097_p10 = scmp.lt.s32.totalorder %s233_s17, %s233_s17  ;;  %p1098_p1 = scmp.lt.s32.totalorder %s1089_s21, %s1089_s21 }
  0x23   : > { %p1092_p8 = pnand %p1090_p7, %p1677_p3 }
  0x24   : > { %p1099_p4 = por %p1098_p1, %p1097_p10 }
  0x25   : > { %p1093_p9 = pneg %p1092_p8 }
  0x27   : > { %p1100_p12 = pnand %p1099_p4, %p1093_p9 }
  0x29   : > { %1103 = shalt.err (!%p1100_p12)
}
  0x2a   : > { %s1673_s22 = smov 128   ;;  %s1675_s23 = smov 8  }
  0x2b   : > { %s1696_s3 = sld [smem:[#allocation20_spill]]  ;;  %s1433_s9 = sshll.u32 %s1286_s27, 8 }
  0x2c   : > { %p1439_p4 = pnand %p1025_p0, %p1380_p5  ;;  %s286_s21 = sand.u32 1, %s1286_s27  }
  0x2d   : > { %s1698_s1 = sld [smem:[#allocation19_spill]]  ;;  %s1453_s11 = scalar_lea.sflag [#allocation6], %s286_s21 }
  0x2e   : > { %p1459_p12 = pneg %p1439_p4 }
  0x31   : > { %1005 = dma.hbm_to_vmem [thread:$0]  (!%p1409_p2), %s1696_s3, 512, %s233_s17, [#allocation9], %s1673_s22, %s1673_s22, %s1675_s23  }
  0x32   : > { %s290_s17 = scalar_lea.vmem [#allocation5], %s1417_s20 }
  0x33   : > { %s1448_s30 = scalar_lea.hbm %s1698_s1, %s1433_s9  ;;  %s297_s29 = sshll.u32 %s290_s17, 4  ;;  %s1451_s29 = int_to_ptr.vmem [resolvable:$true] %s297_s29 }
  0x34   : > { %s1104_s8 = scalar_lea.hbm %s1448_s30, 256  ;;  %s1109_s23 = scalar_lea.hbm %s1698_s1, 1024 }
  0x35   : > { %p1105_p5 = scmp.ne.s32.totalorder %s1448_s30, %s1104_s8  ;;  %p1110_p8 = scmp.lt.s32.totalorder %s1448_s30, %s1698_s1 }
  0x36   : > { %p1111_p9 = scmp.lt.s32.totalorder %s1109_s23, %s1104_s8 }
  0x37   : > { %p1107_p0 = pnand %p1459_p12, %p1105_p5 }
  0x38   : > { %p1112_p10 = por %p1111_p9, %p1110_p8 }
  0x39   : > { %p1108_p7 = pneg %p1107_p0 }
  0x3b   : > { %p1113_p1 = pnand %p1112_p10, %p1108_p7 }
  0x3d   : > { %1116 = shalt.err (!%p1113_p1)
}
  0x3e   : > { %s1117_s21 = scalar_lea.vmem %s1451_s29, 256  ;;  %s1291_s14 = smov [#allocation5]  }
  0x3f   : > { %p1118_p3 = scmp.ne.s32.totalorder %s1451_s29, %s1117_s21  ;;  %s1122_s10 = sshll.u32 %s1291_s14, 4  ;;  %s1123_s10 = int_to_ptr.vmem [resolvable:$false] %s1122_s10 }
  0x40   : > { %s1124_s19 = scalar_lea.vmem %s1123_s10, 512  ;;  %p1125_p11 = scmp.lt.s32.totalorder %s1451_s29, %s1123_s10 }
  0x41   : > { %p1120_p5 = pnand %p1118_p3, %p1459_p12  ;;  %p1126_p6 = scmp.lt.s32.totalorder %s1124_s19, %s1117_s21 }
  0x43   : > { %p1121_p0 = pneg %p1120_p5  ;;  %p1127_p13 = por %p1126_p6, %p1125_p11 }
  0x45   : > { %p1128_p2 = pnand %p1127_p13, %p1121_p0 }
  0x47   : > { %1131 = shalt.err (!%p1128_p2)
}
  0x48   : > { %s1700_s3 = smov 8   ;;  %s1701_s23 = smov 128  }
  0x49   : > { %1015 = dma.hbm_to_vmem [thread:$0]  (!%p1439_p4), %s1448_s30, 256, %s1451_s29, %s1453_s11, %s1701_s23, %s1701_s23, %s1700_s3  }
  0x4a   : > { %s1292_s8 = smov [#allocation10]   ;;  %p1702_p7 = scmp.ne.s32.totalorder %s1695_s18, 0 }
  0x4b   : > { %s245_s17 = sshll.u32 %s1292_s8, 4  ;;  %s246_s17 = int_to_ptr.vmem [resolvable:$true] %s245_s17 }
  0x4c   : > { %s1143_s14 = scalar_lea.vmem %s246_s17, 512  ;;  %p1703_p8 = pneg %p1702_p7 }
  0x4d   : > { %p1144_p3 = scmp.ne.s32.totalorder %s246_s17, %s1143_s14  ;;  %p1151_p13 = scmp.lt.s32.totalorder %s246_s17, %s246_s17 }
  0x4e   : > { %p1152_p2 = scmp.lt.s32.totalorder %s1143_s14, %s1143_s14 }
  0x4f   : > { %p1146_p6 = pnand %p1144_p3, %p1703_p8 }
  0x50   : > { %p1153_p9 = por %p1152_p2, %p1151_p13 }
  0x51   : > { %p1147_p11 = pneg %p1146_p6 }
  0x53   : > { %p1154_p10 = pnand %p1153_p9, %p1147_p11 }
  0x55   : > { %1157 = shalt.err (!%p1154_p10)
}
  0x56   : > { %s1704_s4 = sld [smem:[#allocation21_spill]]  ;;  %s1500_s19 = scalar_lea.hbm %s1661_s0, %s1433_s9 }
  0x57   : > { %s269_s18 = scalar_lea.vmem [#allocation2], %s1417_s20  ;;  %s1705_s14 = sand.u32 1, %s1282_s26  }
  0x58   : > { %s276_s8 = sshll.u32 %s269_s18, 4  ;;  %s266_s1 = scalar_lea.sflag [#allocation3], %s1705_s14  ;;  %s1503_s8 = int_to_ptr.vmem [resolvable:$true] %s276_s8 }
  0x59   : > { %s1158_s30 = scalar_lea.hbm %s1500_s19, 256  ;;  %s1163_s21 = scalar_lea.hbm %s1661_s0, 1024 }
  0x5a   : > { %p1159_p1 = scmp.ne.s32.totalorder %s1500_s19, %s1158_s30  ;;  %p1164_p3 = scmp.lt.s32.totalorder %s1500_s19, %s1661_s0 }
  0x5c   : > { %1008 = dma.hbm_to_vmem [thread:$0]  (!%p1702_p7), %s1704_s4, 512, %s246_s17, [#allocation9], %s1701_s23, %s1701_s23, %s1700_s3  }
  0x5d   : > { %p1161_p5 = pnand %p1159_p1, %p1459_p12  ;;  %p1165_p7 = scmp.lt.s32.totalorder %s1163_s21, %s1158_s30 }
  0x5f   : > { %p1162_p0 = pneg %p1161_p5  ;;  %p1166_p8 = por %p1165_p7, %p1164_p3 }
  0x61   : > { %p1167_p6 = pnand %p1166_p8, %p1162_p0 }
  0x63   : > { %1170 = shalt.err (!%p1167_p6)
}
  0x64   : > { %s1171_s18 = scalar_lea.vmem %s1503_s8, 256  ;;  %s1293_s14 = smov [#allocation2]  }
  0x65   : > { %p1172_p11 = scmp.ne.s32.totalorder %s1503_s8, %s1171_s18  ;;  %s1176_s17 = sshll.u32 %s1293_s14, 4  ;;  %s1177_s17 = int_to_ptr.vmem [resolvable:$false] %s1176_s17 }
  0x66   : > { %s1178_s29 = scalar_lea.vmem %s1177_s17, 512  ;;  %p1179_p9 = scmp.lt.s32.totalorder %s1503_s8, %s1177_s17 }
  0x67   : > { %p1174_p13 = pnand %p1172_p11, %p1459_p12  ;;  %p1180_p10 = scmp.lt.s32.totalorder %s1178_s29, %s1171_s18 }
  0x69   : > { %p1175_p2 = pneg %p1174_p13  ;;  %p1181_p1 = por %p1180_p10, %p1179_p9 }
  0x6b   : > { %p1182_p5 = pnand %p1181_p1, %p1175_p2 }
  0x6d   : > { %1185 = shalt.err (!%p1182_p5)
}
  0x6e   : > { %1012 = dma.hbm_to_vmem [thread:$0]  (!%p1439_p4), %s1500_s19, 256, %s1503_s8, %s266_s1, %s1701_s23, %s1701_s23, %s1700_s3  }
  0x6f   : > { %s1534_s21 = scalar_lea.hbm %s1663_s2, %s1433_s9  ;;  %s311_s10 = scalar_lea.vmem [#allocation7], %s1417_s20 }
  0x70   : > { %s318_s18 = sshll.u32 %s311_s10, 4  ;;  %s1186_s14 = scalar_lea.hbm %s1534_s21, 256  ;;  %s319_s18 = int_to_ptr.vmem [resolvable:$true] %s318_s18 }
  0x71   : > { %p1187_p0 = scmp.ne.s32.totalorder %s1534_s21, %s1186_s14  ;;  %s1191_s1 = scalar_lea.hbm %s1663_s2, 1024 }
  0x72   : > { %p1192_p8 = scmp.lt.s32.totalorder %s1534_s21, %s1663_s2  ;;  %p1193_p6 = scmp.lt.s32.totalorder %s1191_s1, %s1186_s14 }
  0x73   : > { %p1189_p3 = pnand %p1187_p0, %p1459_p12 }
  0x74   : > { %p1194_p11 = por %p1193_p6, %p1192_p8 }
  0x75   : > { %p1190_p7 = pneg %p1189_p3 }
  0x77   : > { %p1195_p13 = pnand %p1194_p11, %p1190_p7 }
  0x79   : > { %1198 = shalt.err (!%p1195_p13)
}
  0x7a   : > { %s1199_s20 = scalar_lea.vmem %s319_s18, 256  ;;  %s1294_s9 = smov [#allocation7]  }
  0x7b   : > { %p1200_p2 = scmp.ne.s32.totalorder %s319_s18, %s1199_s20  ;;  %s1204_s4 = sshll.u32 %s1294_s9, 4  ;;  %s1205_s4 = int_to_ptr.vmem [resolvable:$false] %s1204_s4 }
  0x7c   : > { %s1206_s30 = scalar_lea.vmem %s1205_s4, 512  ;;  %p1207_p1 = scmp.lt.s32.totalorder %s319_s18, %s1205_s4 }
  0x7d   : > { %p1202_p9 = pnand %p1200_p2, %p1459_p12  ;;  %p1208_p5 = scmp.lt.s32.totalorder %s1206_s30, %s1199_s20 }
  0x7f   : > { %p1203_p10 = pneg %p1202_p9  ;;  %p1209_p0 = por %p1208_p5, %p1207_p1 }
  0x81   : > { %p1210_p3 = pnand %p1209_p0, %p1203_p10 }
  0x83   : > { %1213 = shalt.err (!%p1210_p3)
}
  0x84   : > { %1018 = dma.hbm_to_vmem [thread:$0]  (!%p1439_p4), %s1534_s21, 256, %s319_s18, %s1453_s11, %s1701_s23, %s1701_s23, %s1700_s3  }
  0x85   : > { %p1706_p12 = scmp.ne.s32.totalorder %s1694_s15, 0 }
  0x86   : > { %s1560_s22 = sand.u32 (!%p1706_p12), 1, %s1278_s25   ;;  %p1707_p7 = scmp.ne.s32.totalorder (!%p1706_p12), %s1690_s12, 0 }
  0x87   : > { %330 = sbr.rel (%p1706_p12) target bundleno = 1040 (0x410), region = 48  ;;  %s1563_s10 = sshll.u32 (!%p1706_p12), %s1560_s22, 4 }
  0x88   : > { %s333_s14 = scalar_lea.sflag (!%p1706_p12), [#allocation3], %s1560_s22  ;;  %s336_s16 = scalar_lea.vmem (!%p1706_p12), [#allocation2], %s1563_s10 }
  0x8c   : > { %1257 = dma.done.wait (%p1707_p7), %s333_s14, 256  }
  0x8d   : > { %1259 = vsyncadd (%p1707_p7), %s333_s14, 4294967040  ;;  %s341_s15 = sand.u32 1, %s1362_s28   ;;  %s345_s3 = scalar_lea.vmem [#allocation5], %s1563_s10 }
  0x8e   : > { %s342_s11 = scalar_lea.sflag [#allocation6], %s341_s15 }
  0x8f   : > { %1261 = dma.done.wait (%p1707_p7), %s342_s11, 512  }
  0x90   : > { %1263 = vsyncadd (%p1707_p7), %s342_s11, 4294966784  ;;  %s354_s23 = scalar_lea.vmem [#allocation7], %s1563_s10  ;;  %p1708_p4 = scmp.eq.s32.totalorder %s1362_s28, 0 }
  0x92   : > { %1265 = dma.done.wait (%p1708_p4), [#allocation9], 1024   ;;  %p1709_p8 = pmov %p1708_p4 }
  0x93   : > { %v412_v0 = vld [vmem:[#allocation8 + $0x18] sm:$0xff]  ;;  %v411_v2 = vld [vmem:[#allocation8 + $0x10] sm:$0xff]  ;;  %v410_v4 = vld [vmem:[#allocation8 + $0x8] sm:$0xff]  ;;  %vm420_vm0 = vcmask 261120   ;;  %s1295_s18 = smov 64   ;;  %s1296_s1 = smov 32  }
  0x94   : > { %1267 = vsyncadd (%p1709_p8), [#allocation9], 4294966272  ;;  %v505_v1 = vld [vmem:[#allocation10 + $0x18] sm:$0xff]  ;;  %957 = vmatprep.subr.mxu0 %v412_v0  ;;  %v504_v3 = vld [vmem:[#allocation10 + $0x10] sm:$0xff]  ;;  %s1297_s19 = smov 96   ;;  %vm668_vm1 = vcmask 130048  }
  0x95   : > { %968 = vmatprep.subr.mxu1 %v505_v1  ;;  %958 = vmatpush3.msra.mxu0 %v412_v0  ;;  %v503_v5 = vld [vmem:[#allocation10 + $0x8] sm:$0xff]  ;;  %v409_v6 = vld [vmem:[#allocation8] sm:$0xff]  ;;  %s402_s8 = scalar_lea.vmem [#allocation11], %s1563_s10  ;;  %s940_s9 = sshll.u32 %s1362_s28, 8 }
  0x96   : > { %969 = vmatpush3.msra.mxu1 %v505_v1  ;;  %959 = vmatprep.subr.mxu0 %v411_v2  ;;  %v502_v7 = vld [vmem:[#allocation10] sm:$0xff]  ;;  %v404_v10 = vld [vmem:[%s336_s16 + $0x8] sm:$0xff]  ;;  %s766_s20 = sshll.u32 %s402_s8, 4  ;;  %s1617_s14 = scalar_lea.hbm %s1668_s7, %s940_s9  ;;  %s1612_s20 = int_to_ptr.vmem [resolvable:$true] %s766_s20 }
  0x97   : > { %970 = vmatprep.subr.mxu1 %v504_v3  ;;  %960 = vmatpush3.msra.mxu0 %v411_v2  ;;  %v403_v8 = vld [vmem:[%s336_s16] sm:$0xff]  ;;  %v406_v11 = vld [vmem:[%s345_s3 + $0x8] sm:$0xff]  ;;  %s753_s28 = scalar_lea.sflag [#allocation4], %s1560_s22  ;;  %s1214_s10 = scalar_lea.vmem %s1612_s20, 256 }
  0x98   : > { %971 = vmatpush3.msra.mxu1 %v504_v3  ;;  %961 = vmatprep.subr.mxu0 %v410_v4  ;;  %v405_v9 = vld [vmem:[%s345_s3] sm:$0xff]  ;;  %v408_v57 = vld [vmem:[%s354_s23 + $0x8] sm:$0xff]  ;;  %p1215_p6 = scmp.ne.s32.totalorder %s1612_s20, %s1214_s10  ;;  %p1710_p11 = scmp.ne.s32.totalorder %s1691_s13, 0 }
  0x99   : > { %972 = vmatprep.subr.mxu1 %v503_v5  ;;  %962 = vmatpush3.msra.mxu0 %v410_v4  ;;  %v925_v12 = vld [vmem:[%s1667_s6] ss:$0 sm:$0xff]  ;;  %s1298_s16 = smov [#allocation11]  }
  0x9a   : > { %973 = vmatpush3.msra.mxu1 %v503_v5  ;;  %963 = vmatprep.subr.mxu0 %v409_v6  ;;  %v922_v18 = vld [vmem:[%s1666_s5] ss:$0 sm:$0xff]  ;;  %p1216_p13 = pnand %p1215_p6, %p1710_p11  ;;  %s1218_s15 = sshll.u32 %s1298_s16, 4  ;;  %s1219_s15 = int_to_ptr.vmem [resolvable:$false] %s1218_s15 }
  0x9b   : > { %974 = vmatprep.subr.mxu1 %v502_v7  ;;  %964 = vmatpush3.msra.mxu0 %v409_v6  ;;  %v407_v43 = vld [vmem:[%s354_s23] sm:$0xff]  ;;  %s1220_s11 = scalar_lea.vmem %s1219_s15, 512  ;;  %p1221_p9 = scmp.lt.s32.totalorder %s1612_s20, %s1219_s15 }
  0x9c   : > { %965 = vmatprep.mubr.msk.f32.mxu0 %vm420_vm0, %v403_v8  ;;  %975 = vmatpush3.msra.mxu1 %v502_v7  ;;  %p1217_p2 = pneg %p1216_p13  ;;  %p1222_p10 = scmp.lt.s32.totalorder %s1220_s11, %s1214_s10 }
  0x9d   : > { %976 = vmatprep.mubr.msk.f32.mxu1 %vm420_vm0, %v405_v9  ;;  %966 = vmatmul.mubr.msk.f32.vlgmr.msra.gmra.mxu0 %vm420_vm0, %v404_v10 }
  0x9e   : > { %977 = vmatmul.mubr.msk.f32.vlgmr.msra.gmra.mxu1 %vm420_vm0, %v406_v11  ;;  %983 = vmatprep.mubr.msk.f32.mxu0 %vm668_vm1, %v407_v43  ;;  %p1223_p1 = por %p1222_p10, %p1221_p9 }
  0xa0   : > { %p1224_p5 = pnand %p1223_p1, %p1217_p2 }
 0x15d   : > { %v967_v17 = vpop.f32.mrf.mxu0 }
 0x15e   : > { %v978_v13 = vpop.f32.mrf.mxu1  ;;  %v499_v19 = vadd.f32 %v967_v17, %v922_v18 }
 0x15f   : > { %v591_v14 = vadd.f32 %v978_v13, %v925_v12  ;;  %v493_v20 = vpop.f32.mrf.mxu0 }
 0x160   : > { %v585_v15 = vpop.f32.mrf.mxu1  ;;  %v494_v22 = vadd.f32 %v922_v18, %v493_v20 }
 0x161   : > { %612 = vrot.lane.b32.xlu0 %v591_v14, %s1295_s18  ;;  %v586_v16 = vadd.f32 %v925_v12, %v585_v15  ;;  %v595_v21 = vadd.f32 %v591_v14, %v499_v19 }
 0x163   : > { %v929_v23 = vmul.f32 -1.442695, %v595_v21  ;;  %v594_v24 = vadd.f32 %v586_v16, %v494_v22 }
 0x165   : > { %610 = vrot.lane.b32.xlu0 %v586_v16, %s1295_s18  ;;  %1070 = vpow2.f32 %v929_v23  ;;  %v928_v25 = vmul.f32 -1.442695, %v594_v24 }
 0x167   : > { %1072 = vpow2.f32 %v928_v25 }
 0x172   : > { %v1071_v26 = vpop.eup %1070 }
 0x173   : > { %v603_v27 = vadd.f32 1.0, %v1071_v26 }
 0x174   : > { %v1073_v28 = vpop.eup %1072 }
 0x175   : > { %1074 = vrcp.f32 %v603_v27  ;;  %v602_v29 = vadd.f32 1.0, %v1073_v28 }
 0x177   : > { %1076 = vrcp.f32 %v602_v29 }
 0x182   : > { %v1075_v30 = vpop.eup %1074 }
 0x183   : > { %v631_v44 = vsub.f32 1.0, %v1075_v30 }
 0x184   : > { %v1077_v33 = vpop.eup %1076 }
 0x185   : > { %v630_v50 = vsub.f32 1.0, %v1077_v33 }
 0x1d3   : > { %v613_v31 = vpop.permute.xlu0 %612 }
 0x1d4   : > { %v617_v32 = vmul.f32 %v1075_v30, %v613_v31 }
 0x1d6   : > { %622 = vrot.lane.b32.xlu1 %v617_v32, %s1295_s18 }
 0x1d7   : > { %v611_v34 = vpop.permute.xlu0 %610 }
 0x1d8   : > { %v616_v35 = vmul.f32 %v1077_v33, %v611_v34 }
 0x1da   : > { %620 = vrot.lane.b32.xlu1 %v616_v35, %s1295_s18 }
 0x1de   : > { %644 = vrot.lane.b32.xlu1 %v406_v11, %s1296_s1 }
 0x1e2   : > { %642 = vrot.lane.b32.xlu1 %v405_v9, %s1296_s1 }
 0x248   : > { %v623_v36 = vpop.permute.xlu1 %622 }
 0x249   : > { %v627_v37 = vadd.f32 %v623_v36, %v499_v19 }
 0x24b   : > { %v629_v38 = vmax.f32 %v627_v37, 0.0 }
 0x24c   : > { %v621_v39 = vpop.permute.xlu1 %620 }
 0x24d   : > { %v626_v40 = vadd.f32 %v621_v39, %v494_v22  ;;  %636 = vrot.lane.b32.xlu0 %v629_v38, %s1297_s19 }
 0x24f   : > { %v628_v41 = vmax.f32 %v626_v40, 0.0 }
 0x250   : > { %v645_v42 = vpop.permute.xlu1 %644 }
 0x251   : > { %634 = vrot.lane.b32.xlu0 %v628_v41, %s1297_s19  ;;  %v649_v46 = vmul.f32 %v1075_v30, %v645_v42 }
 0x254   : > { %v643_v48 = vpop.permute.xlu1 %642 }
 0x255   : > { %v648_v52 = vmul.f32 %v1077_v33, %v643_v48 }
 0x2bf   : > { %v637_v45 = vpop.permute.xlu0 %636 }
 0x2c0   : > { %v641_v47 = vmul.f32 %v637_v45, %v631_v44 }
 0x2c2   : > { %v651_v49 = vadd.f32 %v649_v46, %v641_v47 }
 0x2c3   : > { %v635_v51 = vpop.permute.xlu0 %634 }
 0x2c4   : > { %v640_v53 = vmul.f32 %v635_v51, %v630_v50  ;;  %656 = vrot.lane.b32.xlu0 %v651_v49, %s1297_s19 }
 0x2c6   : > { %v650_v54 = vadd.f32 %v648_v52, %v640_v53 }
 0x2c8   : > { %662 = vrot.lane.b32.xlu0 %v494_v22, %s1296_s1  ;;  %654 = vrot.lane.b32.xlu1 %v650_v54, %s1297_s19 }
 0x2cc   : > { %664 = vrot.lane.b32.xlu1 %v499_v19, %s1296_s1 }
 0x336   : > { %v657_v55 = vpop.permute.xlu0 %656 }
 0x337   : > { %979 = vmatprep.subr.mxu0 %v657_v55 }
 0x338   : > { %980 = vmatpush3.msra.mxu0 %v657_v55 }
 0x33a   : > { %v655_v56 = vpop.permute.xlu1 %654  ;;  %v663_v61 = vpop.permute.xlu0 %662 }
 0x33b   : > { %981 = vmatprep.subr.mxu0 %v655_v56 }
 0x33c   : > { %982 = vmatpush3.msra.mxu0 %v655_v56 }
 0x33d   : > { %984 = vmatmul.mubr.msk.f32.vlgmr.msra.gmra.mxu0 %vm668_vm1, %v408_v57 }
 0x33e   : > { %v665_v58 = vpop.permute.xlu1 %664 }
 0x3fd   : > { %v985_v59 = vpop.f32.mrf.mxu0 }
 0x3fe   : > { %v747_v60 = vadd.f32 %v985_v59, %v665_v58 }
 0x3ff   : > { %v741_v62 = vpop.f32.mrf.mxu0 }
 0x400   : > { %751 = vst.msk [vmem:[%s402_s8 + $0x8] sm:$0xff] %vm420_vm0, %v747_v60  ;;  %v742_v63 = vadd.f32 %v741_v62, %v663_v61 }
 0x402   : > { %750 = vst.msk [vmem:[%s402_s8] sm:$0xff] %vm420_vm0, %v742_v63 }
 0x403   : > { %1227 = shalt.err (!%p1224_p5)
}
 0x404   : > { %s1228_s3 = scalar_lea.hbm %s1617_s14, 256  ;;  %s1232_s21 = scalar_lea.hbm %s1668_s7, 1024 }
 0x405   : > { %p1229_p0 = scmp.ne.s32.totalorder %s1617_s14, %s1228_s3  ;;  %p1233_p7 = scmp.lt.s32.totalorder %s1617_s14, %s1668_s7 }
 0x406   : > { %p1234_p4 = scmp.lt.s32.totalorder %s1232_s21, %s1228_s3 }
 0x407   : > { %p1230_p3 = pnand %p1229_p0, %p1710_p11 }
 0x408   : > { %p1235_p8 = por %p1234_p4, %p1233_p7 }
 0x409   : > { %p1231_p12 = pneg %p1230_p3 }
 0x40b   : > { %p1236_p6 = pnand %p1235_p8, %p1231_p12 }
 0x40d   : > { %1239 = shalt.err (!%p1236_p6)
}
 0x40e   : > { %s1299_s29 = smov 128   ;;  %s1300_s1 = smov 8  }
 0x40f   : > { %1000 = dma.vmem_to_hbm [thread:$0]  (%p1710_p11), %s1612_s20, 256, %s1617_s14, %s753_s28, %s1299_s29, %s1299_s29, %s1300_s1  }
 0x410 PF: > { %s1711_s19 = sld [smem:[#allocation18_spill]]  ;;  %p1028_p13 = scmp.ge.s32.totalorder %s1286_s27, 2 }
 0x411   : > { %s781_s8 = sand.u32 1, %s1274_s24  }
 0x412   : > { %s782_s9 = scalar_lea.sflag [#allocation4], %s781_s8 }
 0x416   : > { %p1712_p2 = scmp.ne.s32.totalorder %s1711_s19, 0 }
 0x418   : > { %p1020_p9 = pnand %p1028_p13, %p1712_p2 }
 0x41a   : > { %p1021_p10 = pneg %p1020_p9 }
 0x41c   : > { %1269 = dma.done.wait (%p1021_p10), %s782_s9, 256  }
 0x41d   : > { %1271 = vsyncadd (%p1021_p10), %s782_s9, 4294967040  ;;  %s1713_s27 = sld [smem:[#allocation16_spill]]  ;;  %s1715_s24 = smov %s1278_s25 }
 0x41e   : > { %s1714_s4 = sld [smem:[#allocation17_spill]]  ;;  %s1716_s25 = smov %s1282_s26 }
 0x423   : > { %p24_p1 = scmp.ge.s32.totalorder %s1713_s27, 6  }
 0x424   : > { %s1717_s26 = smov %s1714_s4 }
 0x425   :  { %26 = sbr.rel (!%p24_p1) target bundleno = 12 (0xc), region = 125 }
 0x42a   :  { %787 = vsyncpa [#allocation3], 1 }
 0x42b   :  { %789 = vsyncpa [#allocation3 + $0x1], 1 }
 0x42c   :  { %790 = vsyncpa [#allocation6], 1 }
 0x42d   :  { %792 = vsyncpa [#allocation6 + $0x1], 1 }
 0x42e   :  { %793 = vsyncpa [#allocation9], 1 }
 0x42f   :  { %794 = vsyncpa [#allocation4], 1 }
 0x430   :  { %796 = vsyncpa [#allocation4 + $0x1], 1 }

</bundles_post_ra>
